<compile_context>
chip_gen: v7x
topology: tpu7x:2x2x1
jax: 0.10.0
libtpu: 0.0.40
codegen_flags: <defaults>
</compile_context>

<pallas_src>
import jax
import jax.numpy as jnp
from jax.experimental import pallas as pl
from jax.experimental.pallas import tpu as pltpu


def _make_kernel(num_layers, matmul_dtype):
    """refs = [adj, (w, b) * num_layers, w_lin, b_lin, out]."""

    def kernel(*refs):
        a_ref = refs[0]
        layer_refs = refs[1:1 + 2 * num_layers]
        wl_ref, bl_ref, o_ref = refs[1 + 2 * num_layers:]

        a = a_ref[...]                                    # (TB, N, N) f32
        tb, n, _ = a.shape

        # degrees (f32, exact); raw in-degrees double as the input features
        in_deg = jnp.sum(a, axis=2, keepdims=True)        # (TB, N, 1) dst degree
        out_deg = jnp.sum(a, axis=1)[..., None]           # (TB, N, 1) src degree
        in_norm = jax.lax.rsqrt(jnp.maximum(in_deg, 1.0))
        out_norm = jax.lax.rsqrt(jnp.maximum(out_deg, 1.0))

        a_mm = a.astype(matmul_dtype)                     # MXU operand (maybe bf16)

        h = in_deg                                        # (TB, N, 1)  h = in_degrees

        for l in range(num_layers):
            w = layer_refs[2 * l][...]                    # (F_in, H)
            b = layer_refs[2 * l + 1][...]                # (1, H)
            f_in, f_out = w.shape
            if f_in == 1:
                # K=1 contraction -> broadcast multiply on the VPU (no MXU push)
                hw = h * w                                # (TB,N,1)*(1,H) -> (TB,N,H)
            else:
                # flatten batch: one (TB*N, F_in) x (F_in, F_out) MXU matmul
                hw = jnp.dot(h.reshape(tb * n, f_in), w,
                             preferred_element_type=jnp.float32)
                hw = hw.reshape(tb, n, f_out)
            # fused 'both' normalization: in_norm * (A @ (out_norm * hW)) + b
            hw = (hw * out_norm).astype(matmul_dtype)
            agg = jnp.einsum("bnm,bmh->bnh", a_mm, hw,
                             preferred_element_type=jnp.float32)
            h = jnp.maximum(in_norm * agg + b, 0.0)       # relu(GraphConv(g, h))

        h_mean = jnp.mean(h, axis=1)                      # (TB, H)  dgl.mean_nodes
        logits = jnp.dot(h_mean, wl_ref[...],
                         preferred_element_type=jnp.float32) + bl_ref[...]
        o_ref[...] = jax.nn.sigmoid(logits)[:, None, :]   # (TB, 1, out_dim)

    return kernel


def simple_classifier_pallas(adj, layer_params, w_lin, b_lin, *,
                             batch_tile=None, matmul_dtype=jnp.float32):
    """adj: (B, N, N) f32; layer_params: [(w (Fin,H), b (H,)), ...];
    w_lin: (H, out_dim); b_lin: (out_dim,). Returns (B, out_dim) f32."""
    B, N, _ = adj.shape
    num_layers = len(layer_params)
    hidden = layer_params[-1][0].shape[1] if num_layers else 1
    out_dim = w_lin.shape[1]

    tb = min(B, 8) if batch_tile is None else min(batch_tile, B)
    grid = (pl.cdiv(B, tb),)

    flat_inputs = [adj]
    for w, b in layer_params:
        flat_inputs += [w, b.reshape(1, -1)]
    flat_inputs += [w_lin, b_lin.reshape(1, -1)]

    # adjacency tiled over the batch; parameters are block-invariant
    # (constant index map -> fetched once, not re-DMA'd per batch tile).
    in_specs = [pl.BlockSpec((tb, N, N), lambda i: (i, 0, 0))]
    in_specs += [pl.BlockSpec(x.shape, lambda i: (0, 0))
                 for x in flat_inputs[1:]]
    # 3-D output so the last two block dims equal the full array dims
    # (out_dim << 128 stays a masked store; acceptable at this size).
    out_specs = pl.BlockSpec((tb, 1, out_dim), lambda i: (i, 0, 0))

    itemsize = 4
    tile_bytes = tb * N * N * itemsize
    act_bytes = tb * N * max(hidden, 1) * itemsize
    param_bytes = sum(int(x.size) * itemsize for x in flat_inputs[1:])
    vmem_limit = int(min(100 * 2 ** 20,
                         max(16 * 2 ** 20,
                             2 * tile_bytes + 8 * act_bytes
                             + 2 * param_bytes + (2 << 20))))

    out = pl.pallas_call(
        _make_kernel(num_layers, matmul_dtype),
        out_shape=jax.ShapeDtypeStruct((B, 1, out_dim), jnp.float32),
        grid=grid,
        in_specs=in_specs,
        out_specs=out_specs,
        compiler_params=pltpu.CompilerParams(
            dimension_semantics=("parallel",),
            vmem_limit_bytes=vmem_limit),
    )(*flat_inputs)
    return out.reshape(B, out_dim)


def simple_classifier_ref(adj, layer_params, w_lin, b_lin):
    """Pure-JAX f32 reference with identical semantics (correctness check)."""
    in_deg = adj.sum(axis=2, keepdims=True)
    out_deg = adj.sum(axis=1, keepdims=True)
    a_norm = (adj
              * jax.lax.rsqrt(jnp.maximum(in_deg, 1.0))
              * jax.lax.rsqrt(jnp.maximum(out_deg, 1.0)))
    h = in_deg
    for w, b in layer_params:
        h = jnp.maximum(jnp.einsum("bnm,bmf->bnf", a_norm, h @ w) + b, 0.0)
    h_mean = h.mean(axis=1)
    return jax.nn.sigmoid(h_mean @ w_lin + b_lin)


if __name__ == "__main__":
    # Shapes implied by forward: feature starts as in_degrees -> in_dim = 1.
    B, N = 4, 16
    in_dim, num_hidden_dim, hidden_dim, out_dim = 1, 2, 32, 4

    key = jax.random.PRNGKey(0)
    k_adj, key = jax.random.split(key)
    # random directed graphs (~25% edge density), dense 0/1 adjacency
    adj = (jax.random.uniform(k_adj, (B, N, N)) < 0.25).astype(jnp.float32)

    # deterministic parameter init (GraphConv weight: (in_feats, out_feats))
    dims = [in_dim] + [hidden_dim] * num_hidden_dim
    layer_params = []
    for l in range(num_hidden_dim):
        key, kw, kb = jax.random.split(key, 3)
        w = jax.random.normal(kw, (dims[l], dims[l + 1]), jnp.float32) * 0.5
        b = jax.random.normal(kb, (dims[l + 1],), jnp.float32) * 0.1
        layer_params.append((w, b))
    key, kw, kb = jax.random.split(key, 3)
    # nn.Linear weight is (out, in) in torch; stored transposed for x @ W
    w_lin = jax.random.normal(kw, (hidden_dim, out_dim), jnp.float32) * 0.5
    b_lin = jax.random.normal(kb, (out_dim,), jnp.float32) * 0.1

    ref = simple_classifier_ref(adj, layer_params, w_lin, b_lin)

    # f32 path, batch-tiled (grid=(2,), "parallel") — exact vs reference
    out = simple_classifier_pallas(adj, layer_params, w_lin, b_lin,
                                   batch_tile=2)
    out = jax.block_until_ready(out)
    assert out.shape == (B, out_dim)
    assert jnp.allclose(out, ref, rtol=1e-4, atol=1e-5), (out, ref)

    # bf16 MXU path for the aggregation matmul (f32 accumulate / elementwise)
    out_bf16 = simple_classifier_pallas(adj, layer_params, w_lin, b_lin,
                                        batch_tile=2,
                                        matmul_dtype=jnp.bfloat16)
    out_bf16 = jax.block_until_ready(out_bf16)
    assert jnp.allclose(out_bf16, ref, rtol=3e-2, atol=3e-2), (out_bf16, ref)

    # TODO(synk): DGL's batched-graph object with variable nodes-per-graph has
    # no direct Pallas equivalent; graphs are fixed-size dense adjacencies and
    # mean_nodes divides by the padded node count N (mask + real counts needed
    # for ragged batches).
    print("KERNEL_OK")
</pallas_src>

<mosaic_0001>
module attributes {stable_mosaic.version = 11 : i64} {
  func.func @kernel(%arg0: i32, %arg1: memref<2x16x16xf32, #tpu.memory_space<vmem>>, %arg2: memref<1x32xf32, #tpu.memory_space<vmem>>, %arg3: memref<1x32xf32, #tpu.memory_space<vmem>>, %arg4: memref<32x32xf32, #tpu.memory_space<vmem>>, %arg5: memref<1x32xf32, #tpu.memory_space<vmem>>, %arg6: memref<32x4xf32, #tpu.memory_space<vmem>>, %arg7: memref<1x4xf32, #tpu.memory_space<vmem>>, %arg8: memref<2x1x4xf32, #tpu.memory_space<vmem>>) attributes {dimension_semantics = [#tpu.dimension_semantics<parallel>], iteration_bounds = array<i64: 2>, scalar_prefetch = 0 : i64, scratch_operands = 0 : i64, tpu.core_type = #tpu.core_type<tc>, window_params = [{transform_indices = @transform_0, window_bounds = array<i64: 2, 16, 16>}, {pipeline_mode = #tpu.pipeline_mode<synchronous>, transform_indices = @transform_1, window_bounds = array<i64: 1, 32>}, {pipeline_mode = #tpu.pipeline_mode<synchronous>, transform_indices = @transform_2, window_bounds = array<i64: 1, 32>}, {pipeline_mode = #tpu.pipeline_mode<synchronous>, transform_indices = @transform_3, window_bounds = array<i64: 32, 32>}, {pipeline_mode = #tpu.pipeline_mode<synchronous>, transform_indices = @transform_4, window_bounds = array<i64: 1, 32>}, {pipeline_mode = #tpu.pipeline_mode<synchronous>, transform_indices = @transform_5, window_bounds = array<i64: 32, 4>}, {pipeline_mode = #tpu.pipeline_mode<synchronous>, transform_indices = @transform_6, window_bounds = array<i64: 1, 4>}, {transform_indices = @transform_7, window_bounds = array<i64: 2, 1, 4>}]} {
    %c0 = arith.constant 0 : index
    %c0_0 = arith.constant 0 : index
    %c0_1 = arith.constant 0 : index
    %0 = vector.load %arg1[%c0, %c0_0, %c0_1] : memref<2x16x16xf32, #tpu.memory_space<vmem>>, vector<2x16x16xf32>
    %cst = arith.constant dense<0.000000e+00> : vector<2x16xf32>
    %1 = vector.multi_reduction <add>, %0, %cst [2] : vector<2x16x16xf32> to vector<2x16xf32>
    %2 = vector.shape_cast %1 : vector<2x16xf32> to vector<2x16x1xf32>
    %cst_2 = arith.constant dense<0.000000e+00> : vector<2x16xf32>
    %3 = vector.multi_reduction <add>, %0, %cst_2 [1] : vector<2x16x16xf32> to vector<2x16xf32>
    %4 = vector.shape_cast %3 : vector<2x16xf32> to vector<2x16x1xf32>
    %cst_3 = arith.constant 1.000000e+00 : f32
    %5 = vector.broadcast %cst_3 : f32 to vector<2x16x1xf32>
    %6 = arith.maximumf %2, %5 : vector<2x16x1xf32>
    %7 = math.rsqrt %6 : vector<2x16x1xf32>
    %cst_4 = arith.constant 1.000000e+00 : f32
    %8 = vector.broadcast %cst_4 : f32 to vector<2x16x1xf32>
    %9 = arith.maximumf %4, %8 : vector<2x16x1xf32>
    %10 = math.rsqrt %9 : vector<2x16x1xf32>
    %c0_5 = arith.constant 0 : index
    %c0_6 = arith.constant 0 : index
    %11 = vector.load %arg2[%c0_5, %c0_6] : memref<1x32xf32, #tpu.memory_space<vmem>>, vector<1x32xf32>
    %c0_7 = arith.constant 0 : index
    %c0_8 = arith.constant 0 : index
    %12 = vector.load %arg3[%c0_7, %c0_8] : memref<1x32xf32, #tpu.memory_space<vmem>>, vector<1x32xf32>
    %13 = vector.shape_cast %11 : vector<1x32xf32> to vector<1x1x32xf32>
    %14 = vector.broadcast %2 : vector<2x16x1xf32> to vector<2x16x32xf32>
    %15 = vector.broadcast %13 : vector<1x1x32xf32> to vector<2x16x32xf32>
    %16 = arith.mulf %14, %15 : vector<2x16x32xf32>
    %17 = vector.broadcast %10 : vector<2x16x1xf32> to vector<2x16x32xf32>
    %18 = arith.mulf %16, %17 : vector<2x16x32xf32>
    "tpu.trace_start"() <{level = 10 : i32, message = "bnm,bmh->bnh"}> : () -> ()
    %cst_9 = arith.constant dense<0.000000e+00> : vector<2x16x32xf32>
    %19 = tpu.matmul %0, %18, %cst_9 {dimension_numbers = #tpu.dot_dimension_numbers<[2], [1], [1], [2], [0, 0, 0, 1, 1, 2], [0], [0]>} : vector<2x16x16xf32>, vector<2x16x32xf32>, vector<2x16x32xf32> -> vector<2x16x32xf32>
    "tpu.trace_stop"() : () -> ()
    %20 = vector.broadcast %7 : vector<2x16x1xf32> to vector<2x16x32xf32>
    %21 = arith.mulf %20, %19 : vector<2x16x32xf32>
    %22 = vector.shape_cast %12 : vector<1x32xf32> to vector<1x1x32xf32>
    %23 = vector.broadcast %22 : vector<1x1x32xf32> to vector<2x16x32xf32>
    %24 = arith.addf %21, %23 : vector<2x16x32xf32>
    %cst_10 = arith.constant 0.000000e+00 : f32
    %25 = vector.broadcast %cst_10 : f32 to vector<2x16x32xf32>
    %26 = arith.maximumf %24, %25 : vector<2x16x32xf32>
    %c0_11 = arith.constant 0 : index
    %c0_12 = arith.constant 0 : index
    %27 = vector.load %arg4[%c0_11, %c0_12] : memref<32x32xf32, #tpu.memory_space<vmem>>, vector<32x32xf32>
    %c0_13 = arith.constant 0 : index
    %c0_14 = arith.constant 0 : index
    %28 = vector.load %arg5[%c0_13, %c0_14] : memref<1x32xf32, #tpu.memory_space<vmem>>, vector<1x32xf32>
    %29 = vector.shape_cast %26 : vector<2x16x32xf32> to vector<32x32xf32>
    %cst_15 = arith.constant dense<0.000000e+00> : vector<32x32xf32>
    %30 = tpu.matmul %29, %27, %cst_15 {dimension_numbers = #tpu.dot_dimension_numbers<[1], [0], [0], [1], [0, 0, 1, 1], [], []>} : vector<32x32xf32>, vector<32x32xf32>, vector<32x32xf32> -> vector<32x32xf32>
    %31 = vector.shape_cast %30 : vector<32x32xf32> to vector<2x16x32xf32>
    %32 = vector.broadcast %10 : vector<2x16x1xf32> to vector<2x16x32xf32>
    %33 = arith.mulf %31, %32 : vector<2x16x32xf32>
    "tpu.trace_start"() <{level = 10 : i32, message = "bnm,bmh->bnh"}> : () -> ()
    %cst_16 = arith.constant dense<0.000000e+00> : vector<2x16x32xf32>
    %34 = tpu.matmul %0, %33, %cst_16 {dimension_numbers = #tpu.dot_dimension_numbers<[2], [1], [1], [2], [0, 0, 0, 1, 1, 2], [0], [0]>} : vector<2x16x16xf32>, vector<2x16x32xf32>, vector<2x16x32xf32> -> vector<2x16x32xf32>
    "tpu.trace_stop"() : () -> ()
    %35 = vector.broadcast %7 : vector<2x16x1xf32> to vector<2x16x32xf32>
    %36 = arith.mulf %35, %34 : vector<2x16x32xf32>
    %37 = vector.shape_cast %28 : vector<1x32xf32> to vector<1x1x32xf32>
    %38 = vector.broadcast %37 : vector<1x1x32xf32> to vector<2x16x32xf32>
    %39 = arith.addf %36, %38 : vector<2x16x32xf32>
    %cst_17 = arith.constant 0.000000e+00 : f32
    %40 = vector.broadcast %cst_17 : f32 to vector<2x16x32xf32>
    %41 = arith.maximumf %39, %40 : vector<2x16x32xf32>
    %cst_18 = arith.constant dense<0.000000e+00> : vector<2x32xf32>
    %42 = vector.multi_reduction <add>, %41, %cst_18 [1] : vector<2x16x32xf32> to vector<2x32xf32>
    %cst_19 = arith.constant 1.600000e+01 : f32
    %43 = vector.broadcast %cst_19 : f32 to vector<2x32xf32>
    %44 = arith.divf %42, %43 : vector<2x32xf32>
    %c0_20 = arith.constant 0 : index
    %c0_21 = arith.constant 0 : index
    %45 = vector.load %arg6[%c0_20, %c0_21] : memref<32x4xf32, #tpu.memory_space<vmem>>, vector<32x4xf32>
    %cst_22 = arith.constant dense<0.000000e+00> : vector<2x4xf32>
    %46 = tpu.matmul %44, %45, %cst_22 {dimension_numbers = #tpu.dot_dimension_numbers<[1], [0], [0], [1], [0, 0, 1, 1], [], []>} : vector<2x32xf32>, vector<32x4xf32>, vector<2x4xf32> -> vector<2x4xf32>
    %c0_23 = arith.constant 0 : index
    %c0_24 = arith.constant 0 : index
    %47 = vector.load %arg7[%c0_23, %c0_24] : memref<1x4xf32, #tpu.memory_space<vmem>>, vector<1x4xf32>
    %48 = vector.broadcast %47 : vector<1x4xf32> to vector<2x4xf32>
    %49 = arith.addf %46, %48 : vector<2x4xf32>
    %50 = arith.negf %49 : vector<2x4xf32>
    %51 = math.exp %50 : vector<2x4xf32>
    %cst_25 = arith.constant 1.000000e+00 : f32
    %52 = vector.broadcast %cst_25 : f32 to vector<2x4xf32>
    %53 = arith.addf %52, %51 : vector<2x4xf32>
    %54 = arith.divf %52, %53 : vector<2x4xf32>
    %55 = vector.shape_cast %54 : vector<2x4xf32> to vector<2x1x4xf32>
    %c0_26 = arith.constant 0 : index
    %c0_27 = arith.constant 0 : index
    %c0_28 = arith.constant 0 : index
    %56 = vector.load %arg8[%c0_26, %c0_27, %c0_28] : memref<2x1x4xf32, #tpu.memory_space<vmem>>, vector<2x1x4xf32>
    tpu.vector_store %arg8[%c0_26, %c0_27, %c0_28], %55 {strides = array<i32>} : memref<2x1x4xf32, #tpu.memory_space<vmem>>, vector<2x1x4xf32>,
    return
  }
  func.func @transform_0(%arg0: i32) -> (i32, i32, i32) {
    %c0_i32 = arith.constant 0 : i32
    %c0_i32_0 = arith.constant 0 : i32
    %c0_i32_1 = arith.constant 0 : i32
    return %arg0, %c0_i32, %c0_i32_0 : i32, i32, i32
  }
  func.func @transform_1(%arg0: i32) -> (i32, i32) {
    %c0_i32 = arith.constant 0 : i32
    %c0_i32_0 = arith.constant 0 : i32
    %c0_i32_1 = arith.constant 0 : i32
    return %c0_i32, %c0_i32_0 : i32, i32
  }
  func.func @transform_2(%arg0: i32) -> (i32, i32) {
    %c0_i32 = arith.constant 0 : i32
    %c0_i32_0 = arith.constant 0 : i32
    %c0_i32_1 = arith.constant 0 : i32
    return %c0_i32, %c0_i32_0 : i32, i32
  }
  func.func @transform_3(%arg0: i32) -> (i32, i32) {
    %c0_i32 = arith.constant 0 : i32
    %c0_i32_0 = arith.constant 0 : i32
    %c0_i32_1 = arith.constant 0 : i32
    return %c0_i32, %c0_i32_0 : i32, i32
  }
  func.func @transform_4(%arg0: i32) -> (i32, i32) {
    %c0_i32 = arith.constant 0 : i32
    %c0_i32_0 = arith.constant 0 : i32
    %c0_i32_1 = arith.constant 0 : i32
    return %c0_i32, %c0_i32_0 : i32, i32
  }
  func.func @transform_5(%arg0: i32) -> (i32, i32) {
    %c0_i32 = arith.constant 0 : i32
    %c0_i32_0 = arith.constant 0 : i32
    %c0_i32_1 = arith.constant 0 : i32
    return %c0_i32, %c0_i32_0 : i32, i32
  }
  func.func @transform_6(%arg0: i32) -> (i32, i32) {
    %c0_i32 = arith.constant 0 : i32
    %c0_i32_0 = arith.constant 0 : i32
    %c0_i32_1 = arith.constant 0 : i32
    return %c0_i32, %c0_i32_0 : i32, i32
  }
  func.func @transform_7(%arg0: i32) -> (i32, i32, i32) {
    %c0_i32 = arith.constant 0 : i32
    %c0_i32_0 = arith.constant 0 : i32
    %c0_i32_1 = arith.constant 0 : i32
    return %arg0, %c0_i32, %c0_i32_0 : i32, i32, i32
  }
}

</mosaic_0001>

<bundles_post_ra>
// kernel: tpu_custom_call.1
= control target key start
LH: loop header
LB: loop body
LE: loop exit
PB: predicated region body
PF: predicated region fallthrough
CT: control target
= control target key end

     0   :  { %12 = vsyncpa [#allocation3], 0  ;;  %s1691_s0 = inlined_call_operand.hbm [shape: f32[4,16,16], index: 0, kind: input, shape index: {}]   ;;  %s1692_s1 = inlined_call_operand.vmem [shape: f32[1,32], index: 1, kind: input, shape index: {}]   ;;  %s1693_s2 = inlined_call_operand.vmem [shape: f32[1,32], index: 2, kind: input, shape index: {}]   ;;  %s1694_s3 = inlined_call_operand.vmem [shape: f32[32,32], index: 3, kind: input, shape index: {}]   ;;  %s1695_s4 = inlined_call_operand.vmem [shape: f32[1,32], index: 4, kind: input, shape index: {}]   ;;  %s1696_s5 = inlined_call_operand.vmem [shape: f32[32,4], index: 5, kind: input, shape index: {}]   ;;  %s1697_s6 = inlined_call_operand.vmem [shape: f32[1,4], index: 6, kind: input, shape index: {}]   ;;  %s1698_s7 = inlined_call_operand.hbm [shape: f32[4,1,4], index: 7, kind: output, shape index: {}]  }
   0x1   :  { %14 = vsyncpa [#allocation3 + $0x1], 0 }
   0x2   :  { %15 = vsyncpa [#allocation4], 0 }
   0x3   :  { %17 = vsyncpa [#allocation4 + $0x1], 0  ;;  %s1431_s24 = smov 0   ;;  %s1433_s25 = smov 0  }
   0x4   :  { %s1435_s26 = smov 0   ;;  %s1437_s27 = smov 0  }
   0x5 LB: > { %s1452_s28 = sadd.s32 4294967295, %s1379_s27   ;;  %s1061_s29 = sadd.s32 4294967294, %s1379_s27   ;;  %s1379_s27 = sphi %s1437_s27, %s1711_s27   ;;  %s1375_s26 = sphi %s1435_s26, %s1710_s26   ;;  %s1371_s25 = sphi %s1433_s25, %s1709_s25   ;;  %s1367_s24 = sphi %s1431_s24, %s1708_s24  }
   0x6   : > { %s1456_s30 = sadd.s32 1, %s1379_s27   ;;  %s30_s8 = sadd.s32 1, %s1375_s26 }
   0x7   : > { %s27_s9 = ssub.s32 %s1379_s27, %s1456_s30  ;;  %p37_p0 = scmp.ne.s32.totalorder %s1375_s26, %s1371_s25 }
   0x8   : > { %p28_p1 = scmp.eq.s32.totalorder %s27_s9, 0  ;;  %p38_p2 = scmp.eq.s32.totalorder %s1379_s27, 0 }
   0x9   : > { %p43_p3 = scmp.ne.s32.totalorder %s1371_s25, %s1367_s24  ;;  %p44_p4 = scmp.eq.s32.totalorder %s1452_s28, 0 }
   0xa   : > { %s1468_s10 = scalar_select %p28_p1, %s1375_s26, %s30_s8  }
   0xb   : > { %p1470_p5 = por %p38_p2, %p37_p0  ;;  %p1474_p6 = por %p44_p4, %p43_p3 }
   0xc   : > { %p193_p7 = scmp.eq.s32.totalorder %s1452_s28, 1  ;;  %p199_p8 = scmp.eq.s32.totalorder %s1061_s29, 1 }
   0xd   : > { %p1221_p10 = scmp.lt.s32.totalorder %s1379_s27, 2  ;;  %s237_s15 = sand.u32 1, %s1375_s26  }
   0xe   : > { %p1481_p11 = por %p193_p7, %p37_p0  ;;  %p1485_p12 = por %p199_p8, %p43_p3 }
   0xf   : > { %s1095_s16 = sshll.u32 %s1379_s27, 9  ;;  %s1064_s17 = sshll.u32 %s237_s15, 5 }
  0x10   : > { %s1702_s13 = scalar_select %p1481_p11, 1, 0 }
  0x11   : > { %s1703_s14 = scalar_select %p1485_p12, 1, 0 }
  0x12   : > { %s1494_s20 = scalar_lea.hbm %s1691_s0, %s1095_s16  ;;  %s241_s21 = scalar_lea.vmem [#allocation2], %s1064_s17 }
  0x13   : > { %s249_s22 = sshll.u32 %s241_s21, 4  ;;  %p1498_p13 = pnand %p1221_p10, %p1470_p5  ;;  %s1502_s22 = int_to_ptr.vmem [resolvable:$true] %s249_s22 }
  0x14   : > { %s1504_s29 = scalar_lea.sflag [#allocation3], %s237_s15  ;;  %s1283_s8 = scalar_lea.hbm %s1494_s20, 512 }
  0x15   : > { %p1284_p0 = scmp.ne.s32.totalorder %s1494_s20, %s1283_s8  ;;  %p1285_p1 = pneg %p1498_p13 }
  0x16   : > { %s1288_s16 = scalar_lea.hbm %s1691_s0, 1024  ;;  %p1289_p4 = scmp.lt.u32.totalorder %s1494_s20, %s1691_s0 }
  0x17   : > { %p1286_p2 = pnand %p1285_p1, %p1284_p0  ;;  %p1290_p5 = scmp.lt.u32.totalorder %s1288_s16, %s1283_s8 }
  0x18   : > { %p1292_p8 = scmp.lt.u32.totalorder %s1283_s8, %s1494_s20 }
  0x19   : > { %p1287_p3 = pneg %p1286_p2  ;;  %p1291_p7 = por %p1290_p5, %p1289_p4 }
  0x1b   : > { %p1293_p10 = por %p1292_p8, %p1291_p7 }
  0x1d   : > { %p1294_p9 = pnand %p1293_p10, %p1287_p3 }
  0x1f   : > { %1297 = shalt.err (!%p1294_p9)
}
  0x20   : > { %s1298_s15 = scalar_lea.vmem %s1502_s22, 512  ;;  %s1381_s19 = smov [#allocation2]  }
  0x21   : > { %p1299_p0 = scmp.ne.s32.totalorder %s1502_s22, %s1298_s15  ;;  %s1303_s21 = sshll.u32 %s1381_s19, 4  ;;  %s1304_s21 = int_to_ptr.vmem [resolvable:$false] %s1303_s21 }
  0x22   : > { %s1305_s9 = scalar_lea.vmem %s1304_s21, 1024  ;;  %p1306_p11 = scmp.lt.s32.totalorder %s1502_s22, %s1304_s21 }
  0x23   : > { %p1301_p2 = pnand %p1299_p0, %p1285_p1  ;;  %p1307_p4 = scmp.lt.s32.totalorder %s1305_s9, %s1298_s15 }
  0x25   : > { %p1302_p12 = pneg %p1301_p2  ;;  %p1308_p5 = por %p1307_p4, %p1306_p11 }
  0x27   : > { %p1309_p7 = pnand %p1308_p5, %p1302_p12 }
  0x29   : > { %1312 = shalt.err (!%p1309_p7)
}
  0x2a   : > { %s1382_s8 = smov 128   ;;  %s1383_s11 = smov 8  }
  0x2b   : > { %1216 = dma.hbm_to_vmem [thread:$0]  (!%p1498_p13), %s1494_s20, 512, %s1502_s22, %s1504_s29, %s1382_s8, %s1382_s8, %s1383_s11  }
  0x2c   : > { %p1068_p9 = scmp.ge.s32.totalorder %s1379_s27, 1  ;;  %p257_p1 = scmp.lt.s32.totalorder %s1379_s27, 3 }
  0x2e   : > { %p258_p3 = pnand %p1068_p9, %p257_p1 }
  0x2f   : > { %s1535_s16 = sand.u32 (!%p258_p3), 1, %s1371_s25  }
  0x30   : > { %261 = sbr.rel (%p258_p3) target bundleno = 1203 (0x4b3), region = 48  ;;  %s1069_s17 = sshll.u32 (!%p258_p3), %s1535_s16, 5 }
  0x31   : > { %s264_s18 = scalar_lea.sflag (!%p258_p3), [#allocation3], %s1535_s16  ;;  %s267_s15 = scalar_lea.vmem (!%p258_p3), [#allocation2], %s1069_s17 }
  0x37   : > { %1358 = dma.done.wait (%p1474_p6), %s264_s18, 512  }
  0x38   : > { %1360 = vsyncadd (%p1474_p6), %s264_s18, 4294966784  ;;  %vm304_vm0 = vcmask 130048   ;;  %v1543_v0 = vld [vmem:[%s267_s15] sm:$0xff]  ;;  %v1545_v1 = vld [vmem:[%s267_s15 + $0x8] sm:$0xff]  ;;  %vm562_vm1 = vcmask 261120   ;;  %vm1385_vm2 = vmmov 0  }
  0x39   : > { %v1547_v2 = vld [vmem:[%s267_s15 + $0x10] sm:$0xff]  ;;  %v305_v3 = vsel %vm304_vm0, %v1543_v0, 0.0  ;;  %v308_v4 = vsel %vm304_vm0, %v1545_v1, 0.0  ;;  %v1553_v5 = vld [vmem:[%s267_s15 + $0x18] sm:$0xff]  ;;  %1130 = vmatprep.mubr.msk.f32.mxu1 %vm304_vm0, %v1543_v0  ;;  %v1071_v26 = vld [vmem:[%s1692_s1] ss:$0 sm:$0xff] }
  0x3a   : > { %306 = vadd.xlane.f32.xlu0 %v305_v3  ;;  %v317_v6 = vadd.f32 %v308_v4, %v305_v3  ;;  %v314_v7 = vsel %vm304_vm0, %v1553_v5, 0.0  ;;  %v311_v8 = vsel %vm304_vm0, %v1547_v2, 0.0  ;;  %v557_v49 = vld [vmem:[%s1694_s3] sm:$0xff]  ;;  %v558_v50 = vld [vmem:[%s1694_s3 + $0x8] sm:$0xff]  ;;  %v559_v52 = vld [vmem:[%s1694_s3 + $0x10] sm:$0xff]  ;;  %vm866_vm3 = vcmask 1041409  }
  0x3b   : > { %v324_v10 = vadd.f32 %v314_v7, %v311_v8  ;;  %v1187_v51 = vpack.c.bf16 %v558_v50, %v557_v49  ;;  %v560_v53 = vld [vmem:[%s1694_s3 + $0x18] sm:$0xff]  ;;  %v1076_v58 = vld [vmem:[%s1693_s2] ss:$0 sm:$0xff]  ;;  %s1070_s18 = sshll.u32 %s1535_s16, 1  ;;  %s1096_s15 = sshll.u32 %s1452_s28, 5  ;;  %vm971_vm4 = vcmask 24576  }
  0x3c   : > { %v318_v9 = vrot.slane %v317_v6, 4  ;;  %v1191_v54 = vpack.c.bf16 %v560_v53, %v559_v52  ;;  %s297_s12 = scalar_lea.vmem [#allocation5], %s1070_s18  ;;  %s1645_s29 = scalar_lea.hbm %s1698_s7, %s1096_s15 }
  0x3d   : > { %v325_v13 = vrot.slane %v324_v10, 4  ;;  %1188 = vmatprep.subr.bf16.mxu0 %v1187_v51  ;;  %s988_s20 = sshll.u32 %s297_s12, 4  ;;  %s975_s19 = scalar_lea.sflag [#allocation4], %s1535_s16  ;;  %s1647_s20 = int_to_ptr.vmem [resolvable:$true] %s988_s20 }
  0x3e   : > { %309 = vadd.xlane.f32.xlu0 %v308_v4  ;;  %v319_v11 = vadd.f32 %v318_v9, %v317_v6  ;;  %1190 = vmatpush3.bf16.msra.mxu0 %v1187_v51  ;;  %s1313_s28 = scalar_lea.vmem %s1647_s20, 32  ;;  %p1705_p11 = scmp.ne.s32.totalorder %s1702_s13, 0 }
  0x3f   : > { %v326_v16 = vadd.f32 %v325_v13, %v324_v10  ;;  %1192 = vmatprep.subr.bf16.mxu0 %v1191_v54  ;;  %p1314_p6 = scmp.ne.s32.totalorder %s1647_s20, %s1313_s28  ;;  %s1388_s21 = smov [#allocation5]  }
  0x40   : > { %v320_v12 = vrot.slane %v319_v11, 2  ;;  %s1317_s9 = sshll.u32 %s1388_s21, 4  ;;  %s1318_s9 = int_to_ptr.vmem [resolvable:$false] %s1317_s9 }
  0x41   : > { %v327_v18 = vrot.slane %v326_v16, 2  ;;  %p1315_p12 = pnand %p1314_p6, %p1705_p11  ;;  %s1319_s8 = scalar_lea.vmem %s1318_s9, 64 }
  0x42   : > { %v321_v14 = vadd.f32 %v320_v12, %v319_v11  ;;  %312 = vadd.xlane.f32.xlu0 %v311_v8  ;;  %1194 = vmatpush3.bf16.msra.mxu0 %v1191_v54  ;;  %p1320_p8 = scmp.lt.s32.totalorder %s1647_s20, %s1318_s9  ;;  %p1321_p10 = scmp.lt.s32.totalorder %s1319_s8, %s1313_s28 }
  0x43   : > { %v328_v19 = vadd.f32 %v327_v18, %v326_v16  ;;  %p1316_p13 = pneg %p1315_p12 }
  0x44   : > { %v322_v15 = vrot.slane %v321_v14, 1  ;;  %p1322_p0 = por %p1321_p10, %p1320_p8 }
  0x45   : > { %v329_v20 = vrot.slane %v328_v19, 1 }
  0x46   : > { %v323_v17 = vadd.f32 %v322_v15, %v321_v14  ;;  %p1323_p2 = pnand %p1322_p0, %p1316_p13 }
  0x47   : > { %v330_v21 = vadd.f32 %v329_v20, %v328_v19 }
  0x48   : > { %332 = vbcast.lane.b32.xlu1 %v323_v17, 256 }
  0x4c   : > { %336 = vbcast.lane.b32.xlu1 %v323_v17, 264 }
  0x58   : > { %339 = vbcast.lane.b32.xlu0 %v330_v21, 256 }
  0x5c   : > { %343 = vbcast.lane.b32.xlu0 %v330_v21, 264 }
  0x70   : > { %315 = vadd.xlane.f32.xlu1 %v314_v7 }
  0xba   : > { %v333_v22 = vpop.permute.xlu1 %332 }
  0xbb   : > { %v353_v23 = vmax.f32 %v333_v22, 1.0 }
  0xbd   : > { %1263 = vrsqrt.f32 %v353_v23 }
  0xbe   : > { %v337_v24 = vpop.permute.xlu1 %336 }
  0xbf   : > { %v354_v25 = vmax.f32 %v337_v24, 1.0 }
  0xc1   : > { %1265 = vrsqrt.f32 %v354_v25 }
  0xc7   : > { %v307_v27 = vpop.xlane.xlu0 %306  ;;  %v1564_v30 = vpop.eup %1263 }
  0xc8   : > { %v369_v28 = vmul.f32 %v1071_v26, %v307_v27  ;;  %v345_v56 = vmax.f32 %v307_v27, 1.0 }
  0xca   : > { %v373_v33 = vmul.f32 %v1564_v30, %v369_v28 }
  0xcb   : > { %v310_v29 = vpop.xlane.xlu0 %309  ;;  %v1566_v32 = vpop.eup %1265 }
  0xcc   : > { %v370_v31 = vmul.f32 %v1071_v26, %v310_v29  ;;  %v346_v55 = vmax.f32 %v310_v29, 1.0  ;;  %v853_v29 = vld [vmem:[%s1696_s5] sm:$0xff] }
  0xce   : > { %v374_v34 = vmul.f32 %v1566_v32, %v370_v31  ;;  %v855_v31 = vld [vmem:[%s1696_s5 + $0x10] sm:$0xff] }
  0xcf   : > { %v313_v36 = vpop.xlane.xlu0 %312 }
  0xd0   : > { %v1179_v35 = vpack.c.bf16 %v374_v34, %v373_v33  ;;  %v371_v42 = vmul.f32 %v1071_v26, %v313_v36  ;;  %v347_v8 = vmax.f32 %v313_v36, 1.0  ;;  %v1386_v33 = vmov 0.0   ;;  %v1085_v34 = vld [vmem:[%s1695_s4] ss:$0 sm:$0xff] }
  0xd2   : > { %1180 = vmatprep.subr.bf16.mxu1 %v1179_v35 }
  0xd3   : > { %1182 = vmatpush3.bf16.msra.mxu1 %v1179_v35  ;;  %v340_v37 = vpop.permute.xlu0 %339 }
  0xd4   : > { %v355_v39 = vmax.f32 %v340_v37, 1.0 }
  0xd6   : > { %1131 = vmatmul.mubr.msk.f32.vlgmr.msra.gmra.mrb[0].mxu1 %vm304_vm0, %v1545_v1  ;;  %1267 = vrsqrt.f32 %v355_v39 }
  0xd7   : > { %1137 = vmatprep.mubr.msk.f32.mxu1 %vm304_vm0, %v1547_v2  ;;  %v344_v38 = vpop.permute.xlu0 %343 }
  0xd8   : > { %v356_v40 = vmax.f32 %v344_v38, 1.0 }
  0xda   : > { %1269 = vrsqrt.f32 %v356_v40 }
  0xdb   : > { %1271 = vrsqrt.f32 %v346_v55 }
  0xdc   : > { %1273 = vrsqrt.f32 %v345_v56 }
  0xe0   : > { %v1574_v41 = vpop.eup %1267 }
  0xe1   : > { %v375_v47 = vmul.f32 %v1574_v41, %v371_v42 }
  0xe4   : > { %v1576_v43 = vpop.eup %1269 }
  0xe5   : > { %v1596_v57 = vpop.eup %1271 }
  0xe6   : > { %v1274_v60 = vpop.eup %1273 }
  0xfd   : > { %v316_v44 = vpop.xlane.xlu1 %315 }
  0xfe   : > { %v372_v45 = vmul.f32 %v1071_v26, %v316_v44  ;;  %v348_v7 = vmax.f32 %v316_v44, 1.0 }
 0x100   : > { %v376_v46 = vmul.f32 %v1576_v43, %v372_v45  ;;  %1275 = vrsqrt.f32 %v348_v7 }
 0x101   : > { %1277 = vrsqrt.f32 %v347_v8 }
 0x102   : > { %v1183_v48 = vpack.c.bf16 %v376_v46, %v375_v47 }
 0x104   : > { %1184 = vmatprep.subr.bf16.mxu1 %v1183_v48 }
 0x105   : > { %1186 = vmatpush3.bf16.msra.mxu1 %v1183_v48 }
 0x108   : > { %1138 = vmatmul.mubr.msk.f32.vlgmr.msra.gmra.mrb[2].mxu1 %vm304_vm0, %v1553_v5 }
 0x109   : > { %1158 = vmatprep.mubr.msk.f32.mxu1 %vm304_vm0, %v1543_v0 }
 0x10a   : > { %v1276_v9 = vpop.eup %1275 }
 0x10b   : > { %v1278_v11 = vpop.eup %1277 }
 0x1a9   : > { %v1132_v59 = vpop.f32.mrb[0].mxu1 }
 0x1aa   : > { %v540_v61 = vmul.f32 %v1596_v57, %v1132_v59  ;;  %v449_v62 = vpop.f32.mrb[1].mxu1 }
 0x1ab   : > { %v539_v63 = vmul.f32 %v1274_v60, %v449_v62 }
 0x1ac   : > { %v550_v0 = vadd.f32 %v1076_v58, %v540_v61 }
 0x1ad   : > { %v549_v3 = vadd.f32 %v1076_v58, %v539_v63 }
 0x1ae   : > { %v554_v6 = vmax.f32 %v550_v0, 0.0 }
 0x1af   : > { %v553_v4 = vmax.f32 %v549_v3, 0.0 }
 0x1b1   : > { %1148 = vmatprep.mubr.msk.f32.mxu0 %vm562_vm1, %v553_v4 }
 0x1b2   : > { %1149 = vmatmul.mubr.msk.f32.vlgmr.msra.gmra.mrb[0].mxu0 %vm562_vm1, %v554_v6 }
 0x1db   : > { %v1139_v10 = vpop.f32.mrb[2].mxu1 }
 0x1dc   : > { %v542_v12 = vmul.f32 %v1276_v9, %v1139_v10  ;;  %v530_v13 = vpop.f32.mrb[3].mxu1 }
 0x1dd   : > { %v541_v14 = vmul.f32 %v1278_v11, %v530_v13 }
 0x1de   : > { %v552_v15 = vadd.f32 %v1076_v58, %v542_v12 }
 0x1df   : > { %v551_v16 = vadd.f32 %v1076_v58, %v541_v14 }
 0x1e0   : > { %v556_v18 = vmax.f32 %v552_v15, 0.0 }
 0x1e1   : > { %v555_v17 = vmax.f32 %v551_v16, 0.0 }
 0x1e3   : > { %1151 = vmatprep.mubr.msk.f32.mxu0 %vm562_vm1, %v555_v17 }
 0x1e4   : > { %1152 = vmatmul.mubr.msk.f32.gmra.mrb[2].mxu0 %vm562_vm1, %v556_v18  ;;  %v1387_v18 = vmov 1966171168  }
 0x1e5   : > { %1176 = vmatprep.mubr.msk.f32.mxu0 %vm1385_vm2, %v1386_v33 }
 0x285   : > { %v1150_v19 = vpop.f32.mrb[0].mxu0 }
 0x286   : > { %v661_v20 = vmul.f32 %v1566_v32, %v1150_v19  ;;  %v641_v21 = vpop.f32.mrb[1].mxu0  ;;  %v948_v19 = vunpack.c.l.s4 %v1387_v18 }
 0x287   : > { %v660_v22 = vmul.f32 %v1564_v30, %v641_v21  ;;  %v1384_v30 = vmov 0.0|0.0  }
 0x288   : > { %1203 = vmatprep.subr.bf16.mxu0 %v1384_v30  ;;  %v949_v21 = vunpack.c.0.s8 %v948_v19 }
 0x289   : > { %v1195_v23 = vpack.c.bf16 %v661_v20, %v660_v22  ;;  %v950_v20 = vlaneseq }
 0x28b   : > { %1196 = vmatprep.subr.bf16.mxu1 %v1195_v23  ;;  %v951_v22 = vshrl.u32 %v950_v20, 7 }
 0x28c   : > { %1198 = vmatpush3.bf16.msra.mxu1 %v1195_v23 }
 0x28d   : > { %v952_v23 = vsub.s32 %v949_v21, %v951_v22 }
 0x28f   : > { %1159 = vmatmul.mubr.msk.f32.vlgmr.msra.gmra.mrb[4].mxu1 %vm304_vm0, %v1545_v1  ;;  %v854_v1 = vld [vmem:[%s1696_s5 + $0x8] sm:$0xff] }
 0x290   : > { %1165 = vmatprep.mubr.msk.f32.mxu1 %vm304_vm0, %v1547_v2  ;;  %v1204_v2 = vpack.c.bf16 %v854_v1, %v853_v29 }
 0x292   : > { %1205 = vmatpush3.bf16.msra.mxu0 %v1204_v2 }
 0x293   : > { %1206 = vmatprep.subr.bf16.mxu0 %v1384_v30 }
 0x2b7   : > { %v1153_v24 = vpop.f32.mrb[2].mxu0 }
 0x2b8   : > { %v663_v25 = vmul.f32 %v1576_v43, %v1153_v24  ;;  %v651_v26 = vpop.f32.mrb[3].mxu0 }
 0x2b9   : > { %v662_v27 = vmul.f32 %v1574_v41, %v651_v26 }
 0x2bb   : > { %v1199_v28 = vpack.c.bf16 %v663_v25, %v662_v27 }
 0x2bd   : > { %1200 = vmatprep.subr.bf16.mxu1 %v1199_v28 }
 0x2be   : > { %1202 = vmatpush3.bf16.msra.mxu1 %v1199_v28 }
 0x2c1   : > { %1166 = vmatmul.mubr.msk.f32.vlgmr.msra.gmra.mrb[6].mxu1 %vm304_vm0, %v1553_v5  ;;  %v856_v5 = vld [vmem:[%s1696_s5 + $0x18] sm:$0xff] }
 0x2c2   : > { %v1207_v32 = vpack.c.bf16 %v856_v5, %v855_v31 }
 0x2c4   : > { %1208 = vmatpush3.bf16.msra.mxu0 %v1207_v32 }
 0x362   : > { %v1160_v35 = vpop.f32.mrb[4].mxu1 }
 0x363   : > { %v815_v36 = vmul.f32 %v1596_v57, %v1160_v35  ;;  %v730_v37 = vpop.f32.mrb[5].mxu1 }
 0x364   : > { %v814_v38 = vmul.f32 %v1274_v60, %v730_v37 }
 0x365   : > { %v825_v39 = vadd.f32 %v1085_v34, %v815_v36 }
 0x366   : > { %v824_v40 = vadd.f32 %v1085_v34, %v814_v38 }
 0x367   : > { %v829_v41 = vmax.f32 %v825_v39, 0.0 }
 0x368   : > { %v828_v42 = vmax.f32 %v824_v40, 0.0 }
 0x369   : > { %v833_v43 = vsel %vm562_vm1, %v829_v41, 0.0 }
 0x36a   : > { %v832_v44 = vsel %vm562_vm1, %v828_v42, 0.0 }
 0x36b   : > { %v834_v45 = vadd.f32 %v833_v43, %v832_v44 }
 0x36d   : > { %v835_v46 = vrot.slane %v834_v45, 4 }
 0x36f   : > { %v836_v51 = vadd.f32 %v835_v46, %v834_v45 }
 0x371   : > { %v837_v56 = vrot.slane %v836_v51, 2 }
 0x373   : > { %v838_v60 = vadd.f32 %v837_v56, %v836_v51 }
 0x375   : > { %v839_v63 = vrot.slane %v838_v60, 1 }
 0x377   : > { %v840_v4 = vadd.f32 %v839_v63, %v838_v60 }
 0x379   : > { %v851_v8 = vmul.f32 0.0625, %v840_v4 }
 0x394   : > { %v1167_v47 = vpop.f32.mrb[6].mxu1 }
 0x395   : > { %v817_v48 = vmul.f32 %v1276_v9, %v1167_v47  ;;  %v805_v49 = vpop.f32.mrb[7].mxu1 }
 0x396   : > { %v816_v50 = vmul.f32 %v1278_v11, %v805_v49  ;;  %v1086_v11 = vld [vmem:[%s1697_s6] ss:$0 sm:$0xff] }
 0x397   : > { %v827_v52 = vadd.f32 %v1085_v34, %v817_v48 }
 0x398   : > { %v826_v53 = vadd.f32 %v1085_v34, %v816_v50 }
 0x399   : > { %v831_v54 = vmax.f32 %v827_v52, 0.0 }
 0x39a   : > { %v830_v55 = vmax.f32 %v826_v53, 0.0 }
 0x39b   : > { %v842_v57 = vsel %vm562_vm1, %v831_v54, 0.0 }
 0x39c   : > { %v841_v58 = vsel %vm562_vm1, %v830_v55, 0.0 }
 0x39d   : > { %v843_v59 = vadd.f32 %v842_v57, %v841_v58 }
 0x39f   : > { %v844_v61 = vrot.slane %v843_v59, 4 }
 0x3a1   : > { %v845_v62 = vadd.f32 %v844_v61, %v843_v59 }
 0x3a3   : > { %v846_v0 = vrot.slane %v845_v62, 2 }
 0x3a5   : > { %v847_v3 = vadd.f32 %v846_v0, %v845_v62 }
 0x3a7   : > { %v848_v6 = vrot.slane %v847_v3, 1 }
 0x3a9   : > { %v849_v7 = vadd.f32 %v848_v6, %v847_v3 }
 0x3ab   : > { %v852_v9 = vmul.f32 0.0625, %v849_v7 }
 0x3ad   : > { %v867_v10 = vsel %vm866_vm3, %v852_v9, %v851_v8 }
 0x3ae   : > { %1177 = vmatmul.mubr.msk.f32.vlgmr.msra.gmra.mrb[4].mxu0 %vm562_vm1, %v867_v10 }
 0x481   : > { %v936_v12 = vpop.f32.mrb[4].mxu0 }
 0x482   : > { %v937_v13 = vadd.f32 %v1086_v11, %v936_v12  ;;  %v1178_v14 = vpop.f32.mrb[5].mxu0 }
 0x484   : > { %v1088_v15 = vmul.f32 -1.442695, %v937_v13 }
 0x486   : > { %1279 = vpow2.f32 %v1088_v15 }
 0x490   : > { %v1280_v16 = vpop.eup %1279 }
 0x491   : > { %v943_v17 = vadd.f32 1.0, %v1280_v16 }
 0x493   : > { %1281 = vrcp.f32 %v943_v17 }
 0x49d   : > { %v1282_v24 = vpop.eup %1281 }
 0x49e   : > { %v953_v25 = vrot.slane %v1282_v24, %v952_v23 }
 0x4a0   : > { %v954_v26 = vcombine.high %v953_v25, %v953_v25  ;;  %v961_v27 = vrot.slane %v953_v25, %v952_v23 }
 0x4a2   : > { %v968_v28 = vrot.slane %v954_v26, %v952_v23  ;;  %972 = vst.msk [vmem:[%s297_s12] sm:$0x1] %vm971_vm4, %v961_v27 }
 0x4a4   : > { %973 = vst.msk [vmem:[%s297_s12 + $0x1] sm:$0x1] %vm971_vm4, %v968_v28 }
 0x4a5   : > { %1326 = shalt.err (!%p1323_p2)
}
 0x4a6   : > { %s1327_s11 = scalar_lea.hbm %s1645_s29, 32  ;;  %s1331_s15 = scalar_lea.hbm %s1698_s7, 64 }
 0x4a7   : > { %p1328_p4 = scmp.ne.s32.totalorder %s1645_s29, %s1327_s11  ;;  %p1332_p9 = scmp.lt.u32.totalorder %s1645_s29, %s1698_s7 }
 0x4a8   : > { %p1333_p1 = scmp.lt.u32.totalorder %s1331_s15, %s1327_s11  ;;  %p1335_p6 = scmp.lt.u32.totalorder %s1327_s11, %s1645_s29 }
 0x4a9   : > { %p1329_p5 = pnand %p1328_p4, %p1705_p11 }
 0x4aa   : > { %p1334_p3 = por %p1333_p1, %p1332_p9 }
 0x4ab   : > { %p1330_p7 = pneg %p1329_p5 }
 0x4ac   : > { %p1336_p12 = por %p1335_p6, %p1334_p3 }
 0x4ae   : > { %p1337_p13 = pnand %p1336_p12, %p1330_p7 }
 0x4b0   : > { %1340 = shalt.err (!%p1337_p13)
}
 0x4b1   : > { %s1389_s23 = smov 16   ;;  %s1390_s28 = smov 1  }
 0x4b2   : > { %1211 = dma.vmem_to_hbm [thread:$0]  (%p1705_p11), %s1647_s20, 32, %s1645_s29, %s975_s19, %s1389_s23, %s1389_s23, %s1390_s28  }
 0x4b3 PF: > { %s1003_s21 = sand.u32 1, %s1367_s24   ;;  %p1706_p8 = scmp.ne.s32.totalorder %s1703_s14, 0 }
 0x4b4   : > { %p1707_p10 = scmp.ge.s32.totalorder %s1379_s27, 2  ;;  %s1004_s9 = scalar_lea.sflag [#allocation4], %s1003_s21 }
 0x4b6   : > { %p1218_p0 = pnand %p1707_p10, %p1706_p8 }
 0x4b8   : > { %1362 = dma.done.wait (!%p1218_p0), %s1004_s9, 32  }
 0x4b9   : > { %1364 = vsyncadd (!%p1218_p0), %s1004_s9, 4294967264  ;;  %p20_p2 = scmp.ge.s32.totalorder %s1456_s30, 4   ;;  %s1708_s24 = smov %s1371_s25 }
 0x4ba   : > { %s1709_s25 = smov %s1375_s26  ;;  %s1710_s26 = smov %s1468_s10 }
 0x4bb   : > { %s1711_s27 = smov %s1456_s30  ;;  %22 = sbr.rel (!%p20_p2) target bundleno = 5 (0x5), region = 93 }
 0x4c2   :  { %1009 = vsyncpa [#allocation3], 1 }
 0x4c3   :  { %1011 = vsyncpa [#allocation3 + $0x1], 1 }
 0x4c4   :  { %1012 = vsyncpa [#allocation4], 1 }
 0x4c5   :  { %1014 = vsyncpa [#allocation4 + $0x1], 1 }

</bundles_post_ra>
